<compile_context>
chip_gen: v7x
topology: tpu7x:2x2x1
jax: 0.10.0
libtpu: 0.0.40
codegen_flags: <defaults>
</compile_context>

<pallas_src>
import jax
import jax.numpy as jnp
from jax.experimental import pallas as pl
from jax.experimental.pallas import tpu as pltpu


def _residual_linear_kernel(x_lhs_ref, w_ref, b_ref, x_res_ref, o_ref, acc_ref):
    """One (tm, tn) output tile of  out = x + x @ W + b.

    Grid = (M tiles, N tiles, K tiles); K is the reduction axis (last).
    bf16 operands feed the MXU; the f32 accumulator lives in VMEM scratch.
    Residual + bias adds happen once, in f32, at the final K step.
    """
    k = pl.program_id(2)

    @pl.when(k == 0)
    def _():
        acc_ref[...] = jnp.zeros_like(acc_ref)

    acc_ref[...] += jnp.dot(
        x_lhs_ref[...], w_ref[...], preferred_element_type=jnp.float32
    )

    @pl.when(k == pl.num_programs(2) - 1)
    def _():
        o_ref[...] = (
            acc_ref[...]
            + x_res_ref[...].astype(jnp.float32)
            + b_ref[...].astype(jnp.float32)
        ).astype(o_ref.dtype)


def residual_linear(x, w, b, *, tm=256, tn=512, tk=512):
    """x: (batch, seq, D); w: (D, D); b: (D,).  Returns x + x @ w + b.

    Tiles: tm rows x tn output-cols, reducing over K in tk chunks.
    Defaults (256, 512, 512) keep per-step VMEM ~4 MiB (double-buffered),
    comfortably inside v7x's 64 MiB / v5e-v6e's 128 MiB.
    """
    batch, seq, d = x.shape
    m = batch * seq

    # Pad lane dim to a multiple of 128 (lane-dense stores), clamp tiles,
    # then pad so the tiles divide the padded dims exactly.
    d128 = pl.cdiv(d, 128) * 128
    tn = min(tn, d128)
    tk = min(tk, d128)
    d_pad = pl.cdiv(d128, tn) * tn
    d_pad = pl.cdiv(d_pad, tk) * tk
    m_pad = pl.cdiv(m, tm) * tm

    x2 = x.reshape(m, d)
    x2_pad = jnp.pad(x2, ((0, m_pad - m), (0, d_pad - d)))
    w_pad = jnp.pad(w, ((0, d_pad - d), (0, d_pad - d)))
    b_pad = jnp.pad(b, ((0, d_pad - d),)).reshape(1, d_pad)

    # bf16 operands for the MXU; residual copy of x stays in its input dtype.
    x_lhs = x2_pad.astype(jnp.bfloat16)
    w_bf = w_pad.astype(jnp.bfloat16)

    grid = (m_pad // tm, d_pad // tn, d_pad // tk)

    out = pl.pallas_call(
        _residual_linear_kernel,
        out_shape=jax.ShapeDtypeStruct((m_pad, d_pad), x.dtype),
        grid_spec=pltpu.PrefetchScalarGridSpec(
            num_scalar_prefetch=0,
            grid=grid,
            in_specs=[
                # LHS x block for the matmul (bf16), tiled over (M, K).
                pl.BlockSpec((tm, tk), lambda i, j, k: (i, k)),
                # W streamed as (tk, tn) blocks over (K, N).
                pl.BlockSpec((tk, tn), lambda i, j, k: (k, j)),
                # Bias slice for this N tile (resident across K).
                pl.BlockSpec((1, tn), lambda i, j, k: (0, j)),
                # Residual x slice aligned with the output tile (resident
                # across K; only read at the final K step).
                pl.BlockSpec((tm, tn), lambda i, j, k: (i, j)),
            ],
            out_specs=pl.BlockSpec((tm, tn), lambda i, j, k: (i, j)),
            scratch_shapes=[pltpu.VMEM((tm, tn), jnp.float32)],
        ),
        compiler_params=pltpu.CompilerParams(
            dimension_semantics=("parallel", "parallel", "arbitrary"),
            vmem_limit_bytes=64 * 1024 * 1024,
        ),
    )(x_lhs, w_bf, b_pad, x2_pad)

    return out[:m, :d].reshape(batch, seq, d)


if __name__ == "__main__":
    # Small shapes consistent with a residual block over token embeddings.
    batch, seq, hidden = 2, 8, 32

    key = jax.random.PRNGKey(0)
    kx, kw, kb = jax.random.split(key, 3)
    x = jax.random.normal(kx, (batch, seq, hidden), dtype=jnp.float32)
    # Deterministic parameter init (synthetic; no checkpoint load).
    w = jax.random.normal(kw, (hidden, hidden), dtype=jnp.float32) * 0.02
    b = jax.random.normal(kb, (hidden,), dtype=jnp.float32) * 0.02

    out = residual_linear(x, w, b)
    jax.block_until_ready(out)

    # Reference check: x + fn(x) with fn = Linear(W, b).  Matmul runs in bf16
    # on the MXU, so tolerances are loosened accordingly.
    ref = x + (jnp.einsum("bsd,de->bse", x, w) + b)
    assert jnp.allclose(out, ref, atol=2e-2, rtol=2e-2), "mismatch vs reference"

    print("KERNEL_OK")
</pallas_src>

<mosaic_0001>
module attributes {stable_mosaic.version = 11 : i64} {
  func.func @_residual_linear_kernel(%arg0: i32, %arg1: i32, %arg2: i32, %arg3: memref<256x128xbf16, #tpu.memory_space<vmem>>, %arg4: memref<128x128xbf16, #tpu.memory_space<vmem>>, %arg5: memref<1x128xf32, #tpu.memory_space<vmem>>, %arg6: memref<256x128xf32, #tpu.memory_space<vmem>>, %arg7: memref<256x128xf32, #tpu.memory_space<vmem>>, %arg8: memref<256x128xf32, #tpu.memory_space<vmem>>) attributes {dimension_semantics = [#tpu.dimension_semantics<parallel>, #tpu.dimension_semantics<parallel>, #tpu.dimension_semantics<arbitrary>], iteration_bounds = array<i64: 1, 1, 1>, scalar_prefetch = 0 : i64, scratch_operands = 1 : i64, tpu.core_type = #tpu.core_type<tc>, window_params = [{transform_indices = @transform_0, window_bounds = array<i64: 256, 128>}, {transform_indices = @transform_1, window_bounds = array<i64: 128, 128>}, {transform_indices = @transform_2, window_bounds = array<i64: 1, 128>}, {transform_indices = @transform_3, window_bounds = array<i64: 256, 128>}, {transform_indices = @transform_4, window_bounds = array<i64: 256, 128>}]} {
    %c0_i32 = arith.constant 0 : i32
    %0 = arith.cmpi eq, %arg2, %c0_i32 : i32
    %1 = arith.extui %0 : i1 to i32
    %c0_i32_0 = arith.constant 0 : i32
    %2 = arith.cmpi ne, %1, %c0_i32_0 : i32
    scf.if %2 {
      %cst_10 = arith.constant 0.000000e+00 : f32
      %12 = vector.broadcast %cst_10 : f32 to vector<256x128xf32>
      %c0_11 = arith.constant 0 : index
      %c0_12 = arith.constant 0 : index
      %13 = vector.load %arg8[%c0_11, %c0_12] : memref<256x128xf32, #tpu.memory_space<vmem>>, vector<256x128xf32>
      tpu.vector_store %arg8[%c0_11, %c0_12], %12 {strides = array<i32>} : memref<256x128xf32, #tpu.memory_space<vmem>>, vector<256x128xf32>,
    } else {
    }
    %c0 = arith.constant 0 : index
    %c0_1 = arith.constant 0 : index
    %3 = vector.load %arg8[%c0, %c0_1] : memref<256x128xf32, #tpu.memory_space<vmem>>, vector<256x128xf32>
    %c0_2 = arith.constant 0 : index
    %c0_3 = arith.constant 0 : index
    %4 = vector.load %arg3[%c0_2, %c0_3] : memref<256x128xbf16, #tpu.memory_space<vmem>>, vector<256x128xbf16>
    %c0_4 = arith.constant 0 : index
    %c0_5 = arith.constant 0 : index
    %5 = vector.load %arg4[%c0_4, %c0_5] : memref<128x128xbf16, #tpu.memory_space<vmem>>, vector<128x128xbf16>
    %cst = arith.constant dense<0.000000e+00> : vector<256x128xf32>
    %6 = tpu.matmul %4, %5, %cst {dimension_numbers = #tpu.dot_dimension_numbers<[1], [0], [0], [1], [0, 0, 1, 1], [], []>} : vector<256x128xbf16>, vector<128x128xbf16>, vector<256x128xf32> -> vector<256x128xf32>
    %7 = arith.addf %3, %6 : vector<256x128xf32>
    %c0_6 = arith.constant 0 : index
    %c0_7 = arith.constant 0 : index
    %8 = vector.load %arg8[%c0_6, %c0_7] : memref<256x128xf32, #tpu.memory_space<vmem>>, vector<256x128xf32>
    tpu.vector_store %arg8[%c0_6, %c0_7], %7 {strides = array<i32>} : memref<256x128xf32, #tpu.memory_space<vmem>>, vector<256x128xf32>,
    %c0_i32_8 = arith.constant 0 : i32
    %9 = arith.cmpi eq, %arg2, %c0_i32_8 : i32
    %10 = arith.extui %9 : i1 to i32
    %c0_i32_9 = arith.constant 0 : i32
    %11 = arith.cmpi ne, %10, %c0_i32_9 : i32
    scf.if %11 {
      %c0_10 = arith.constant 0 : index
      %c0_11 = arith.constant 0 : index
      %12 = vector.load %arg8[%c0_10, %c0_11] : memref<256x128xf32, #tpu.memory_space<vmem>>, vector<256x128xf32>
      %c0_12 = arith.constant 0 : index
      %c0_13 = arith.constant 0 : index
      %13 = vector.load %arg6[%c0_12, %c0_13] : memref<256x128xf32, #tpu.memory_space<vmem>>, vector<256x128xf32>
      %14 = arith.addf %12, %13 : vector<256x128xf32>
      %c0_14 = arith.constant 0 : index
      %c0_15 = arith.constant 0 : index
      %15 = vector.load %arg5[%c0_14, %c0_15] : memref<1x128xf32, #tpu.memory_space<vmem>>, vector<1x128xf32>
      %16 = vector.broadcast %15 : vector<1x128xf32> to vector<256x128xf32>
      %17 = arith.addf %14, %16 : vector<256x128xf32>
      %c0_16 = arith.constant 0 : index
      %c0_17 = arith.constant 0 : index
      %18 = vector.load %arg7[%c0_16, %c0_17] : memref<256x128xf32, #tpu.memory_space<vmem>>, vector<256x128xf32>
      tpu.vector_store %arg7[%c0_16, %c0_17], %17 {strides = array<i32>} : memref<256x128xf32, #tpu.memory_space<vmem>>, vector<256x128xf32>,
    } else {
    }
    return
  }
  func.func @transform_0(%arg0: i32, %arg1: i32, %arg2: i32) -> (i32, i32) {
    %c0_i32 = arith.constant 0 : i32
    return %arg0, %arg2 : i32, i32
  }
  func.func @transform_1(%arg0: i32, %arg1: i32, %arg2: i32) -> (i32, i32) {
    %c0_i32 = arith.constant 0 : i32
    return %arg2, %arg1 : i32, i32
  }
  func.func @transform_2(%arg0: i32, %arg1: i32, %arg2: i32) -> (i32, i32) {
    %c0_i32 = arith.constant 0 : i32
    %c0_i32_0 = arith.constant 0 : i32
    return %c0_i32, %arg1 : i32, i32
  }
  func.func @transform_3(%arg0: i32, %arg1: i32, %arg2: i32) -> (i32, i32) {
    %c0_i32 = arith.constant 0 : i32
    return %arg0, %arg1 : i32, i32
  }
  func.func @transform_4(%arg0: i32, %arg1: i32, %arg2: i32) -> (i32, i32) {
    %c0_i32 = arith.constant 0 : i32
    return %arg0, %arg1 : i32, i32
  }
}

</mosaic_0001>

<bundles_post_ra>
// kernel: tpu_custom_call.1
= control target key start
LH: loop header
LB: loop body
LE: loop exit
PB: predicated region body
PF: predicated region fallthrough
CT: control target
= control target key end

     0   :  { %9 = vsyncpa [#allocation4], 0  ;;  %s1158_s0 = inlined_call_operand.hbm [shape: bf16[256,128], index: 0, kind: input, shape index: {}]   ;;  %s1159_s1 = inlined_call_operand.hbm [shape: bf16[128,128], index: 1, kind: input, shape index: {}]   ;;  %s1160_s2 = inlined_call_operand.hbm [shape: f32[1,128], index: 2, kind: input, shape index: {}]   ;;  %s1161_s3 = inlined_call_operand.hbm [shape: f32[256,128], index: 3, kind: input, shape index: {}]   ;;  %s1162_s4 = inlined_call_operand.hbm [shape: f32[256,128], index: 4, kind: output, shape index: {}]  }
   0x1   :  { %10 = vsyncpa [#allocation7], 0 }
   0x2   :  { %11 = vsyncpa [#allocation10], 0 }
   0x3   :  { %12 = vsyncpa [#allocation5], 0  ;;  %s1010_s15 = smov [#allocation6]   ;;  %s1011_s17 = smov [#allocation3]  }
   0x4   :  { %s30_s16 = sshll.u32 %s1010_s15, 4  ;;  %s18_s18 = sshll.u32 %s1011_s17, 4  ;;  %s31_s16 = int_to_ptr.vmem [resolvable:$true] %s30_s16  ;;  %s1044_s18 = int_to_ptr.vmem [resolvable:$true] %s18_s18 }
   0x5   :  { %s892_s21 = scalar_lea.hbm %s1159_s1, 1024 }
   0x6   :  { %p893_p0 = scmp.ne.s32.totalorder %s1159_s1, %s892_s21  ;;  %p896_p1 = scmp.lt.u32.totalorder %s892_s21, %s1159_s1 }
   0x8   :  { %p898_p2 = pnand %p896_p1, %p893_p0 }
   0xa   :  { %901 = shalt.err (!%p898_p2)
}
   0xb   :  { %s902_s26 = scalar_lea.vmem %s31_s16, 1024  ;;  %p907_p4 = scmp.lt.s32.totalorder %s31_s16, %s31_s16 }
   0xc   :  { %p903_p3 = scmp.ne.s32.totalorder %s31_s16, %s902_s26  ;;  %p908_p5 = scmp.lt.s32.totalorder %s902_s26, %s902_s26 }
   0xe   :  { %p909_p6 = por %p908_p5, %p907_p4 }
  0x10   :  { %p910_p7 = pnand %p909_p6, %p903_p3 }
  0x12   :  { %913 = shalt.err (!%p910_p7)
}
  0x13   :  { %s1012_s27 = smov 64   ;;  %s1013_s28 = smov 4  }
  0x14   :  { %36 = dma.hbm_to_vmem [thread:$0]  %s1159_s1, 1024, %s31_s16, [#allocation7], %s1012_s27, %s1012_s27, %s1013_s28  }
  0x15   :  { %s914_s7 = scalar_lea.hbm %s1158_s0, 2048 }
  0x16   :  { %p915_p8 = scmp.ne.s32.totalorder %s1158_s0, %s914_s7  ;;  %p918_p9 = scmp.lt.u32.totalorder %s914_s7, %s1158_s0 }
  0x18   :  { %p920_p10 = pnand %p918_p9, %p915_p8 }
  0x1a   :  { %923 = shalt.err (!%p920_p10)
}
  0x1b   :  { %s924_s12 = scalar_lea.vmem %s1044_s18, 2048  ;;  %p929_p12 = scmp.lt.s32.totalorder %s1044_s18, %s1044_s18 }
  0x1c   :  { %p925_p11 = scmp.ne.s32.totalorder %s1044_s18, %s924_s12  ;;  %p930_p13 = scmp.lt.s32.totalorder %s924_s12, %s924_s12 }
  0x1e   :  { %p931_p0 = por %p930_p13, %p929_p12 }
  0x20   :  { %p932_p1 = pnand %p931_p0, %p925_p11 }
  0x22   :  { %935 = shalt.err (!%p932_p1)
}
  0x23   :  { %24 = dma.hbm_to_vmem [thread:$0]  %s1158_s0, 2048, %s1044_s18, [#allocation4], %s1012_s27, %s1012_s27, %s1013_s28  }
  0x24   :  { %s1014_s14 = smov [#allocation8]   ;;  %s1015_s16 = smov [#allocation9]  }
  0x25   :  { %s43_s15 = sshll.u32 %s1014_s14, 4  ;;  %s52_s17 = sshll.u32 %s1015_s16, 4  ;;  %s44_s15 = int_to_ptr.vmem [resolvable:$true] %s43_s15  ;;  %s1075_s17 = int_to_ptr.vmem [resolvable:$true] %s52_s17 }
  0x26   :  { %s936_s21 = scalar_lea.hbm %s1160_s2, 16 }
  0x27   :  { %p937_p2 = scmp.ne.s32.totalorder %s1160_s2, %s936_s21  ;;  %p940_p3 = scmp.lt.u32.totalorder %s936_s21, %s1160_s2 }
  0x29   :  { %p942_p4 = pnand %p940_p3, %p937_p2 }
  0x2b   :  { %945 = shalt.err (!%p942_p4)
}
  0x2c   :  { %s946_s0 = scalar_lea.vmem %s44_s15, 16  ;;  %s950_s18 = scalar_lea.vmem %s44_s15, 32 }
  0x2d   :  { %p947_p5 = scmp.ne.s32.totalorder %s44_s15, %s946_s0  ;;  %p951_p6 = scmp.lt.s32.totalorder %s44_s15, %s44_s15 }
  0x2e   :  { %p952_p7 = scmp.lt.s32.totalorder %s950_s18, %s946_s0 }
  0x30   :  { %p953_p8 = por %p952_p7, %p951_p6 }
  0x32   :  { %p954_p9 = pnand %p953_p8, %p947_p5 }
  0x34   :  { %957 = shalt.err (!%p954_p9)
}
  0x35   :  { %46 = dma.hbm_to_vmem [thread:$0]  %s1160_s2, 16, %s44_s15, [#allocation7]  }
  0x36   :  { %s958_s30 = scalar_lea.hbm %s1161_s3, 4096 }
  0x37   :  { %p959_p10 = scmp.ne.s32.totalorder %s1161_s3, %s958_s30  ;;  %p962_p11 = scmp.lt.u32.totalorder %s958_s30, %s1161_s3 }
  0x39   :  { %p964_p12 = pnand %p962_p11, %p959_p10 }
  0x3b   :  { %967 = shalt.err (!%p964_p12)
}
  0x3c   :  { %s968_s9 = scalar_lea.vmem %s1075_s17, 4096  ;;  %p973_p0 = scmp.lt.s32.totalorder %s1075_s17, %s1075_s17 }
  0x3d   :  { %p969_p13 = scmp.ne.s32.totalorder %s1075_s17, %s968_s9  ;;  %p974_p1 = scmp.lt.s32.totalorder %s968_s9, %s968_s9 }
  0x3f   :  { %p975_p2 = por %p974_p1, %p973_p0 }
  0x41   :  { %p976_p3 = pnand %p975_p2, %p969_p13 }
  0x43   :  { %979 = shalt.err (!%p976_p3)
}
  0x44   :  { %s1016_s2 = smov 128   ;;  %s1017_s10 = smov 8  }
  0x45   :  { %58 = dma.hbm_to_vmem [thread:$0]  %s1161_s3, 4096, %s1075_s17, [#allocation10], %s1016_s2, %s1016_s2, %s1017_s10  }
  0x46   :  { %1002 = dma.done.wait [#allocation4], 2048  }
  0x47   :  { %1003 = vsyncadd [#allocation4], 4294965248 }
  0x48   :  { %1004 = dma.done.wait [#allocation7], 1040  }
  0x49   :  { %1005 = vsyncadd [#allocation7], 4294966256 }
  0x4a   :  { %1006 = dma.done.wait [#allocation10], 4096  }
  0x4b   :  { %1007 = vsyncadd [#allocation10], 4294963200  ;;  %v868_v0 = vld [vmem:[#allocation6] sm:$0xff]   ;;  %v869_v1 = vld [vmem:[#allocation6 + $0x8] sm:$0xff]   ;;  %s1018_s3 = smov [#allocation11]  }
  0x4c   :  { %795 = vmatprep.subr.bf16.mxu0 %v868_v0  ;;  %843 = vmatprep.subr.bf16.mxu1 %v868_v0  ;;  %v870_v2 = vld [vmem:[#allocation6 + $0x10] sm:$0xff]   ;;  %v871_v3 = vld [vmem:[#allocation6 + $0x18] sm:$0xff]   ;;  %v876_v4 = vld [vmem:[#allocation3] sm:$0xff]   ;;  %s732_s1 = sshll.u32 %s1018_s3, 4  ;;  %s733_s1 = int_to_ptr.vmem [resolvable:$true] %s732_s1 }
  0x4d   :  { %796 = vmatpush3.bf16.msra.mxu0 %v868_v0  ;;  %851 = vmatpush3.bf16.msra.mxu1 %v868_v0  ;;  %v877_v5 = vld [vmem:[#allocation3 + $0x40] sm:$0xff]   ;;  %v873_v7 = vld [vmem:[#allocation6 + $0x28] sm:$0xff]   ;;  %v874_v8 = vld [vmem:[#allocation6 + $0x30] sm:$0xff]   ;;  %s980_s13 = scalar_lea.vmem %s733_s1, 4096  ;;  %p985_p5 = scmp.lt.s32.totalorder %s733_s1, %s733_s1 }
  0x4e   :  { %797 = vmatprep.subr.bf16.mxu0 %v869_v1  ;;  %844 = vmatprep.subr.bf16.mxu1 %v869_v1  ;;  %v872_v6 = vld [vmem:[#allocation6 + $0x20] sm:$0xff]   ;;  %v875_v9 = vld [vmem:[#allocation6 + $0x38] sm:$0xff]   ;;  %v878_v10 = vld [vmem:[#allocation3 + $0x8] sm:$0xff]   ;;  %p981_p4 = scmp.ne.s32.totalorder %s733_s1, %s980_s13  ;;  %p986_p6 = scmp.lt.s32.totalorder %s980_s13, %s980_s13 }
  0x4f   :  { %811 = vmatprep.mubr.bf16.mxu0 %v876_v4  ;;  %827 = vmatprep.mubr.bf16.mxu1 %v877_v5  ;;  %v879_v11 = vld [vmem:[#allocation3 + $0x48] sm:$0xff]   ;;  %v880_v12 = vld [vmem:[#allocation3 + $0x10] sm:$0xff]   ;;  %v882_v14 = vld [vmem:[#allocation3 + $0x18] sm:$0xff]  }
  0x50   :  { %v881_v13 = vld [vmem:[#allocation3 + $0x50] sm:$0xff]   ;;  %v883_v15 = vld [vmem:[#allocation3 + $0x58] sm:$0xff]   ;;  %v884_v16 = vld [vmem:[#allocation3 + $0x20] sm:$0xff]   ;;  %p987_p7 = por %p986_p6, %p985_p5 }
  0x51   :  { %798 = vmatpush3.bf16.msra.mxu0 %v869_v1  ;;  %852 = vmatpush3.bf16.msra.mxu1 %v869_v1  ;;  %v885_v17 = vld [vmem:[#allocation3 + $0x60] sm:$0xff]   ;;  %v886_v18 = vld [vmem:[#allocation3 + $0x28] sm:$0xff]   ;;  %v888_v20 = vld [vmem:[#allocation3 + $0x30] sm:$0xff]  }
  0x52   :  { %799 = vmatprep.subr.bf16.mxu0 %v870_v2  ;;  %845 = vmatprep.subr.bf16.mxu1 %v870_v2  ;;  %v887_v19 = vld [vmem:[#allocation3 + $0x68] sm:$0xff]   ;;  %v889_v21 = vld [vmem:[#allocation3 + $0x70] sm:$0xff]   ;;  %v890_v22 = vld [vmem:[#allocation3 + $0x38] sm:$0xff]   ;;  %p988_p8 = pnand %p987_p7, %p981_p4 }
  0x53   :  { %v891_v23 = vld [vmem:[#allocation3 + $0x78] sm:$0xff]   ;;  %v592_v26 = vld [vmem:[#allocation9] sm:$0xff]  ;;  %v1109_v29 = vld [vmem:[#allocation8] ss:$0 sm:$0xff] }
  0x54   :  { %v594_v24 = vld [vmem:[#allocation9 + $0x10] sm:$0xff]  ;;  %v608_v27 = vld [vmem:[#allocation9 + $0x80] sm:$0xff]  ;;  %v595_v31 = vld [vmem:[#allocation9 + $0x18] sm:$0xff] }
  0x55   :  { %800 = vmatpush3.bf16.msra.mxu0 %v870_v2  ;;  %853 = vmatpush3.bf16.msra.mxu1 %v870_v2  ;;  %v610_v25 = vld [vmem:[#allocation9 + $0x90] sm:$0xff]  ;;  %v611_v32 = vld [vmem:[#allocation9 + $0x98] sm:$0xff]  ;;  %v593_v37 = vld [vmem:[#allocation9 + $0x8] sm:$0xff] }
  0x56   :  { %801 = vmatprep.subr.bf16.mxu0 %v871_v3  ;;  %846 = vmatprep.subr.bf16.mxu1 %v871_v3  ;;  %v609_v38 = vld [vmem:[#allocation9 + $0x88] sm:$0xff]  ;;  %v598_v57 = vld [vmem:[#allocation9 + $0x30] sm:$0xff]  ;;  %v596_v59 = vld [vmem:[#allocation9 + $0x20] sm:$0xff] }
  0x57   :  { %v614_v58 = vld [vmem:[#allocation9 + $0xb0] sm:$0xff]  ;;  %v612_v60 = vld [vmem:[#allocation9 + $0xa0] sm:$0xff]  ;;  %v599_v63 = vld [vmem:[#allocation9 + $0x38] sm:$0xff] }
  0x58   :  { %v615_v0 = vld [vmem:[#allocation9 + $0xb8] sm:$0xff]  ;;  %v597_v5 = vld [vmem:[#allocation9 + $0x28] sm:$0xff] }
  0x59   :  { %802 = vmatpush3.bf16.msra.mxu0 %v871_v3  ;;  %854 = vmatpush3.bf16.msra.mxu1 %v871_v3 }
  0x5a   :  { %803 = vmatprep.subr.bf16.mxu0 %v872_v6  ;;  %847 = vmatprep.subr.bf16.mxu1 %v872_v6 }
  0x5d   :  { %804 = vmatpush3.bf16.msra.mxu0 %v872_v6  ;;  %855 = vmatpush3.bf16.msra.mxu1 %v872_v6  ;;  %v613_v6 = vld [vmem:[#allocation9 + $0xa8] sm:$0xff] }
  0x5e   :  { %805 = vmatprep.subr.bf16.mxu0 %v873_v7  ;;  %848 = vmatprep.subr.bf16.mxu1 %v873_v7 }
  0x61   :  { %806 = vmatpush3.bf16.msra.mxu0 %v873_v7  ;;  %856 = vmatpush3.bf16.msra.mxu1 %v873_v7 }
  0x62   :  { %807 = vmatprep.subr.bf16.mxu0 %v874_v8  ;;  %849 = vmatprep.subr.bf16.mxu1 %v874_v8 }
  0x65   :  { %808 = vmatpush3.bf16.msra.mxu0 %v874_v8  ;;  %857 = vmatpush3.bf16.msra.mxu1 %v874_v8 }
  0x66   :  { %809 = vmatprep.subr.bf16.mxu0 %v875_v9  ;;  %850 = vmatprep.subr.bf16.mxu1 %v875_v9 }
  0x69   :  { %810 = vmatpush3.bf16.msra.mxu0 %v875_v9  ;;  %858 = vmatpush3.bf16.msra.mxu1 %v875_v9 }
  0x6c   :  { %812 = vmatmul.mubr.bf16.vlgmr.msra.gmra.mrb[0].mxu0 %v878_v10  ;;  %828 = vmatmul.mubr.bf16.vlgmr.msra.gmra.mrb[0].mxu1 %v879_v11 }
  0x6d   :  { %815 = vmatprep.mubr.bf16.mxu0 %v880_v12  ;;  %831 = vmatprep.mubr.bf16.mxu1 %v881_v13 }
  0x74   :  { %816 = vmatmul.mubr.bf16.gmra.mrb[4].mxu0 %v882_v14  ;;  %832 = vmatmul.mubr.bf16.gmra.mrb[4].mxu1 %v883_v15 }
  0x75   :  { %819 = vmatprep.mubr.bf16.mxu0 %v884_v16  ;;  %835 = vmatprep.mubr.bf16.mxu1 %v885_v17 }
  0x7c   :  { %820 = vmatmul.mubr.bf16.gmra.mrb[8].mxu0 %v886_v18  ;;  %836 = vmatmul.mubr.bf16.gmra.mrb[8].mxu1 %v887_v19 }
  0x7d   :  { %823 = vmatprep.mubr.bf16.mxu0 %v888_v20  ;;  %839 = vmatprep.mubr.bf16.mxu1 %v889_v21 }
  0x84   :  { %824 = vmatmul.mubr.bf16.gmra.mrb[12].mxu0 %v890_v22  ;;  %840 = vmatmul.mubr.bf16.gmra.mrb[12].mxu1 %v891_v23 }
 0x13f   :  { %v813_v28 = vpop.f32.mrb[0].mxu0  ;;  %v829_v30 = vpop.f32.mrb[0].mxu1 }
 0x140   :  { %v626_v33 = vadd.f32 %v813_v28, %v594_v24  ;;  %v642_v34 = vadd.f32 %v829_v30, %v610_v25  ;;  %v366_v35 = vpop.f32.mrb[1].mxu0  ;;  %v430_v36 = vpop.f32.mrb[1].mxu1  ;;  %v602_v25 = vld [vmem:[#allocation9 + $0x50] sm:$0xff]  ;;  %v616_v28 = vld [vmem:[#allocation9 + $0xc0] sm:$0xff] }
 0x141   :  { %v624_v39 = vadd.f32 %v592_v26, %v366_v35  ;;  %v640_v40 = vadd.f32 %v608_v27, %v430_v36  ;;  %v814_v41 = vpop.f32.mrb[2].mxu0  ;;  %v830_v42 = vpop.f32.mrb[2].mxu1  ;;  %v618_v26 = vld [vmem:[#allocation9 + $0xd0] sm:$0xff]  ;;  %v600_v27 = vld [vmem:[#allocation9 + $0x40] sm:$0xff] }
 0x142   :  { %v665_v43 = vadd.f32 %v1109_v29, %v626_v33  ;;  %v681_v44 = vadd.f32 %v1109_v29, %v642_v34  ;;  %v627_v45 = vadd.f32 %v814_v41, %v595_v31  ;;  %v643_v46 = vadd.f32 %v830_v42, %v611_v32  ;;  %v369_v47 = vpop.f32.mrb[3].mxu0  ;;  %v433_v48 = vpop.f32.mrb[3].mxu1  ;;  %v603_v32 = vld [vmem:[#allocation9 + $0x58] sm:$0xff] }
 0x143   :  { %v663_v49 = vadd.f32 %v1109_v29, %v624_v39  ;;  %v679_v50 = vadd.f32 %v1109_v29, %v640_v40  ;;  %v625_v51 = vadd.f32 %v593_v37, %v369_v47  ;;  %v641_v52 = vadd.f32 %v609_v38, %v433_v48  ;;  %v619_v33 = vld [vmem:[#allocation9 + $0xd8] sm:$0xff]  ;;  %v601_v38 = vld [vmem:[#allocation9 + $0x48] sm:$0xff] }
 0x144   :  { %697 = vst [vmem:[#allocation11 + $0x10] sm:$0xff] %v665_v43  ;;  %713 = vst [vmem:[#allocation11 + $0x90] sm:$0xff] %v681_v44  ;;  %v666_v53 = vadd.f32 %v1109_v29, %v627_v45  ;;  %v682_v54 = vadd.f32 %v1109_v29, %v643_v46  ;;  %v617_v39 = vld [vmem:[#allocation9 + $0xc8] sm:$0xff] }
 0x145   :  { %695 = vst [vmem:[#allocation11] sm:$0xff] %v663_v49  ;;  %711 = vst [vmem:[#allocation11 + $0x80] sm:$0xff] %v679_v50  ;;  %v664_v55 = vadd.f32 %v1109_v29, %v625_v51  ;;  %v680_v56 = vadd.f32 %v1109_v29, %v641_v52 }
 0x146   :  { %698 = vst [vmem:[#allocation11 + $0x18] sm:$0xff] %v666_v53  ;;  %714 = vst [vmem:[#allocation11 + $0x98] sm:$0xff] %v682_v54 }
 0x147   :  { %696 = vst [vmem:[#allocation11 + $0x8] sm:$0xff] %v664_v55  ;;  %712 = vst [vmem:[#allocation11 + $0x88] sm:$0xff] %v680_v56  ;;  %v817_v61 = vpop.f32.mrb[4].mxu0  ;;  %v833_v62 = vpop.f32.mrb[4].mxu1 }
 0x148   :  { %v630_v1 = vadd.f32 %v817_v61, %v598_v57  ;;  %v646_v2 = vadd.f32 %v833_v62, %v614_v58  ;;  %v382_v3 = vpop.f32.mrb[5].mxu0  ;;  %v446_v4 = vpop.f32.mrb[5].mxu1  ;;  %v606_v58 = vld [vmem:[#allocation9 + $0x70] sm:$0xff]  ;;  %v620_v61 = vld [vmem:[#allocation9 + $0xe0] sm:$0xff] }
 0x149   :  { %v628_v7 = vadd.f32 %v596_v59, %v382_v3  ;;  %v644_v8 = vadd.f32 %v612_v60, %v446_v4  ;;  %v818_v9 = vpop.f32.mrb[6].mxu0  ;;  %v834_v10 = vpop.f32.mrb[6].mxu1  ;;  %v622_v59 = vld [vmem:[#allocation9 + $0xf0] sm:$0xff]  ;;  %v604_v60 = vld [vmem:[#allocation9 + $0x60] sm:$0xff] }
 0x14a   :  { %v669_v11 = vadd.f32 %v1109_v29, %v630_v1  ;;  %v685_v12 = vadd.f32 %v1109_v29, %v646_v2  ;;  %v631_v13 = vadd.f32 %v818_v9, %v599_v63  ;;  %v647_v14 = vadd.f32 %v834_v10, %v615_v0  ;;  %v385_v15 = vpop.f32.mrb[7].mxu0  ;;  %v449_v16 = vpop.f32.mrb[7].mxu1  ;;  %v607_v0 = vld [vmem:[#allocation9 + $0x78] sm:$0xff] }
 0x14b   :  { %v667_v17 = vadd.f32 %v1109_v29, %v628_v7  ;;  %v683_v18 = vadd.f32 %v1109_v29, %v644_v8  ;;  %v629_v19 = vadd.f32 %v597_v5, %v385_v15  ;;  %v645_v20 = vadd.f32 %v613_v6, %v449_v16  ;;  %v623_v1 = vld [vmem:[#allocation9 + $0xf8] sm:$0xff]  ;;  %v605_v6 = vld [vmem:[#allocation9 + $0x68] sm:$0xff] }
 0x14c   :  { %701 = vst [vmem:[#allocation11 + $0x30] sm:$0xff] %v669_v11  ;;  %717 = vst [vmem:[#allocation11 + $0xb0] sm:$0xff] %v685_v12  ;;  %v670_v21 = vadd.f32 %v1109_v29, %v631_v13  ;;  %v686_v22 = vadd.f32 %v1109_v29, %v647_v14  ;;  %v621_v7 = vld [vmem:[#allocation9 + $0xe8] sm:$0xff] }
 0x14d   :  { %699 = vst [vmem:[#allocation11 + $0x20] sm:$0xff] %v667_v17  ;;  %715 = vst [vmem:[#allocation11 + $0xa0] sm:$0xff] %v683_v18  ;;  %v668_v23 = vadd.f32 %v1109_v29, %v629_v19  ;;  %v684_v24 = vadd.f32 %v1109_v29, %v645_v20 }
 0x14e   :  { %702 = vst [vmem:[#allocation11 + $0x38] sm:$0xff] %v670_v21  ;;  %718 = vst [vmem:[#allocation11 + $0xb8] sm:$0xff] %v686_v22 }
 0x14f   :  { %700 = vst [vmem:[#allocation11 + $0x28] sm:$0xff] %v668_v23  ;;  %716 = vst [vmem:[#allocation11 + $0xa8] sm:$0xff] %v684_v24  ;;  %v821_v30 = vpop.f32.mrb[8].mxu0  ;;  %v837_v31 = vpop.f32.mrb[8].mxu1 }
 0x150   :  { %v634_v34 = vadd.f32 %v821_v30, %v602_v25  ;;  %v650_v35 = vadd.f32 %v837_v31, %v618_v26  ;;  %v398_v36 = vpop.f32.mrb[9].mxu0  ;;  %v462_v37 = vpop.f32.mrb[9].mxu1 }
 0x151   :  { %v632_v40 = vadd.f32 %v600_v27, %v398_v36  ;;  %v648_v41 = vadd.f32 %v616_v28, %v462_v37  ;;  %v822_v42 = vpop.f32.mrb[10].mxu0  ;;  %v838_v43 = vpop.f32.mrb[10].mxu1 }
 0x152   :  { %v673_v44 = vadd.f32 %v1109_v29, %v634_v34  ;;  %v689_v45 = vadd.f32 %v1109_v29, %v650_v35  ;;  %v635_v46 = vadd.f32 %v822_v42, %v603_v32  ;;  %v651_v47 = vadd.f32 %v838_v43, %v619_v33  ;;  %v401_v48 = vpop.f32.mrb[11].mxu0  ;;  %v465_v49 = vpop.f32.mrb[11].mxu1 }
 0x153   :  { %v671_v50 = vadd.f32 %v1109_v29, %v632_v40  ;;  %v687_v51 = vadd.f32 %v1109_v29, %v648_v41  ;;  %v633_v52 = vadd.f32 %v601_v38, %v401_v48  ;;  %v649_v53 = vadd.f32 %v617_v39, %v465_v49 }
 0x154   :  { %705 = vst [vmem:[#allocation11 + $0x50] sm:$0xff] %v673_v44  ;;  %721 = vst [vmem:[#allocation11 + $0xd0] sm:$0xff] %v689_v45  ;;  %v674_v54 = vadd.f32 %v1109_v29, %v635_v46  ;;  %v690_v55 = vadd.f32 %v1109_v29, %v651_v47 }
 0x155   :  { %703 = vst [vmem:[#allocation11 + $0x40] sm:$0xff] %v671_v50  ;;  %719 = vst [vmem:[#allocation11 + $0xc0] sm:$0xff] %v687_v51  ;;  %v672_v56 = vadd.f32 %v1109_v29, %v633_v52  ;;  %v688_v57 = vadd.f32 %v1109_v29, %v649_v53 }
 0x156   :  { %706 = vst [vmem:[#allocation11 + $0x58] sm:$0xff] %v674_v54  ;;  %722 = vst [vmem:[#allocation11 + $0xd8] sm:$0xff] %v690_v55 }
 0x157   :  { %704 = vst [vmem:[#allocation11 + $0x48] sm:$0xff] %v672_v56  ;;  %720 = vst [vmem:[#allocation11 + $0xc8] sm:$0xff] %v688_v57  ;;  %v825_v62 = vpop.f32.mrb[12].mxu0  ;;  %v841_v63 = vpop.f32.mrb[12].mxu1 }
 0x158   :  { %v638_v2 = vadd.f32 %v825_v62, %v606_v58  ;;  %v654_v3 = vadd.f32 %v841_v63, %v622_v59  ;;  %v414_v4 = vpop.f32.mrb[13].mxu0  ;;  %v478_v5 = vpop.f32.mrb[13].mxu1 }
 0x159   :  { %v636_v8 = vadd.f32 %v604_v60, %v414_v4  ;;  %v652_v9 = vadd.f32 %v620_v61, %v478_v5  ;;  %v826_v10 = vpop.f32.mrb[14].mxu0  ;;  %v842_v11 = vpop.f32.mrb[14].mxu1 }
 0x15a   :  { %v677_v12 = vadd.f32 %v1109_v29, %v638_v2  ;;  %v693_v13 = vadd.f32 %v1109_v29, %v654_v3  ;;  %v639_v14 = vadd.f32 %v826_v10, %v607_v0  ;;  %v655_v15 = vadd.f32 %v842_v11, %v623_v1  ;;  %v417_v16 = vpop.f32.mrb[15].mxu0  ;;  %v481_v17 = vpop.f32.mrb[15].mxu1 }
 0x15b   :  { %v675_v18 = vadd.f32 %v1109_v29, %v636_v8  ;;  %v691_v19 = vadd.f32 %v1109_v29, %v652_v9  ;;  %v637_v20 = vadd.f32 %v605_v6, %v417_v16  ;;  %v653_v21 = vadd.f32 %v621_v7, %v481_v17 }
 0x15c   :  { %709 = vst [vmem:[#allocation11 + $0x70] sm:$0xff] %v677_v12  ;;  %725 = vst [vmem:[#allocation11 + $0xf0] sm:$0xff] %v693_v13  ;;  %v678_v22 = vadd.f32 %v1109_v29, %v639_v14  ;;  %v694_v23 = vadd.f32 %v1109_v29, %v655_v15 }
 0x15d   :  { %707 = vst [vmem:[#allocation11 + $0x60] sm:$0xff] %v675_v18  ;;  %723 = vst [vmem:[#allocation11 + $0xe0] sm:$0xff] %v691_v19  ;;  %v676_v24 = vadd.f32 %v1109_v29, %v637_v20  ;;  %v692_v25 = vadd.f32 %v1109_v29, %v653_v21 }
 0x15e   :  { %710 = vst [vmem:[#allocation11 + $0x78] sm:$0xff] %v678_v22  ;;  %726 = vst [vmem:[#allocation11 + $0xf8] sm:$0xff] %v694_v23 }
 0x15f   :  { %708 = vst [vmem:[#allocation11 + $0x68] sm:$0xff] %v676_v24  ;;  %724 = vst [vmem:[#allocation11 + $0xe8] sm:$0xff] %v692_v25 }
 0x160   :  { %991 = shalt.err (!%p988_p8)
}
 0x161   :  { %s992_s16 = scalar_lea.hbm %s1162_s4, 4096 }
 0x162   :  { %p993_p9 = scmp.ne.s32.totalorder %s1162_s4, %s992_s16  ;;  %p996_p10 = scmp.lt.u32.totalorder %s992_s16, %s1162_s4 }
 0x164   :  { %p998_p11 = pnand %p996_p10, %p993_p9 }
 0x166   :  { %1001 = shalt.err (!%p998_p11)
}
 0x167   :  { %738 = dma.vmem_to_hbm [thread:$0]  %s733_s1, 4096, %s1162_s4, [#allocation5], %s1016_s2, %s1016_s2, %s1017_s10  }
 0x168   :  { %1008 = dma.done.wait [#allocation5], 4096  }
 0x169   :  { %1009 = vsyncadd [#allocation5], 4294963200 }
 0x16a   :  { %742 = vsyncpa [#allocation4], 1 }
 0x16b   :  { %743 = vsyncpa [#allocation7], 1 }
 0x16c   :  { %744 = vsyncpa [#allocation10], 1 }
 0x16d   :  { %745 = vsyncpa [#allocation5], 1 }

</bundles_post_ra>
